<compile_context>
chip_gen: v6e
topology: v6e:2x2x1
jax: 0.10.0
libtpu: 0.0.40
codegen_flags: <defaults>
</compile_context>

<pallas_src>
import functools

import jax
import jax.numpy as jnp
from jax.experimental import pallas as pl
from jax.experimental.pallas import tpu as pltpu


def resnet_kernel(x_ref, w0_ref, b0_ref, wres_ref, bres_ref, wlast_ref,
                  blast_ref, o_ref, *, nres):
    """One lane-packed batch tile of the full ResNet forward.

    x_ref     : (R, PW)        P packed batch sub-tiles; each scalar replicated
                               across its width-wide lane group
    w0_ref    : (1, PW)        layer-0 weight, tiled P times along lanes
    b0_ref    : (1, PW)        layer-0 bias, tiled P times
    wres_ref  : (nr, PW, PW)   residual weights, block-diagonal, bf16
    bres_ref  : (nr, 1, PW)    residual biases, tiled P times
    wlast_ref : (PW, P)        last-layer weight, block-diagonal columns
    blast_ref : (1, P)         last-layer bias
    o_ref     : (R, P)         packed outputs (column p = batch sub-tile p)
    """
    nr = nres - 1

    # Layer 0: 1 -> W for all P packed sub-tiles at once.  Pure VPU (exact f32
    # multiply-add), full 128-lane density.
    h = jnp.maximum(x_ref[...] * w0_ref[...] + b0_ref[...], 0.0)   # (R, PW) f32

    # Residual blocks: h = h + relu(h @ Wi + bi).  Block-diagonal (PW, PW)
    # bf16 matmuls on the MXU with f32 accumulation; residual carry stays f32.
    def block(h, wi, bi):
        z = jnp.dot(h.astype(wi.dtype), wi,
                    preferred_element_type=jnp.float32) + bi
        return h + jnp.maximum(z, 0.0)

    if nr <= 8:
        # Shallow: static unroll (best LLO scheduling at small depth).
        for i in range(nr):
            h = block(h, wres_ref[i], bres_ref[i])
    else:
        # Deep: bounded live ranges via fori_loop with dynamic layer indexing.
        h = jax.lax.fori_loop(
            0, nr, lambda i, hh: block(hh, wres_ref[i], bres_ref[i]), h)

    # Final layer: W -> 1 per packed sub-tile (block-diagonal column weight).
    y = jnp.dot(h, wlast_ref[...], preferred_element_type=jnp.float32)
    o_ref[...] = (y + blast_ref[...]).astype(o_ref.dtype)


def resnet_forward(x, packed, *, nres, width, tile_b=256):
    """x: (N, 1) float32.  packed: dict from pack_params()."""
    N = x.shape[0]
    W = width
    P = packed["pack"]
    PW = P * W
    tile_b = min(tile_b, N)
    assert N % tile_b == 0, "batch must divide evenly into tiles"
    assert tile_b % (8 * P) == 0, "tile_b must keep packed rows a multiple of 8"

    G = N // tile_b          # grid steps (>= 2 keeps both v7x TensorCores busy)
    R = tile_b // P          # packed rows per tile
    nrb = packed["wres_bd"].shape[0]   # >= 1 even when nres == 1 (padded)

    # Pack P consecutive batch sub-ranges of each tile along the lane axis and
    # replicate each scalar across its width-wide lane group (lane-dense DMA).
    xp = x.reshape(G, P, R).transpose(0, 2, 1).reshape(G * R, P)
    x_lane = jnp.repeat(xp, W, axis=1)                      # (G*R, PW)

    kernel = functools.partial(resnet_kernel, nres=nres)
    full = lambda shape: pl.BlockSpec(shape, lambda i: (0,) * len(shape))

    flops = 2 * N * W * (2 + (nres - 1) * W)
    param_bytes = sum(int(v.size) * v.dtype.itemsize
                      for k, v in packed.items() if k != "pack")
    bytes_accessed = int(x_lane.size) * 4 + G * R * P * 4 + param_bytes

    yp = pl.pallas_call(
        kernel,
        out_shape=jax.ShapeDtypeStruct((G * R, P), jnp.float32),
        grid_spec=pltpu.PrefetchScalarGridSpec(
            num_scalar_prefetch=0,
            grid=(G,),
            in_specs=[
                pl.BlockSpec((R, PW), lambda i: (i, 0)),     # x (lane-dense)
                full((1, PW)),                               # w0 (tiled)
                full((1, PW)),                               # b0 (tiled)
                full((nrb, PW, PW)),                         # residual W (bf16, block-diag)
                full((nrb, 1, PW)),                          # residual b (tiled)
                full((PW, P)),                               # w_last (block-diag cols)
                full((1, P)),                                # b_last
            ],
            out_specs=pl.BlockSpec((R, P), lambda i: (i, 0)),
        ),
        compiler_params=pltpu.CompilerParams(
            dimension_semantics=("parallel",),
            vmem_limit_bytes=32 * 1024 * 1024),
        cost_estimate=pl.CostEstimate(
            flops=flops, transcendentals=0, bytes_accessed=bytes_accessed),
    )(x_lane, packed["w0_t"], packed["b0_t"], packed["wres_bd"],
      packed["bres_t"], packed["wlast_bd"], packed["blast_t"])

    # Unpack lanes back to the original (N, 1) batch order.
    return yp.reshape(G, R, P).transpose(0, 2, 1).reshape(N, 1)


def init_params(key, nres, width):
    """nn.Linear-style init (uniform ±1/sqrt(fan_in)), torch [out, in] layout."""
    W = width
    nr = max(nres - 1, 1)    # pad to >= 1 layer so the weight stack is never empty
    ks = jax.random.split(key, 6)

    def unif(k, shape, fan_in):
        b = 1.0 / jnp.sqrt(fan_in)
        return jax.random.uniform(k, shape, jnp.float32, -b, b)

    w0 = unif(ks[0], (W, 1), 1.0)            # layers[0]: Linear(1, W)
    b0 = unif(ks[1], (W,), 1.0)
    wres = unif(ks[2], (nr, W, W), float(W))  # layers[1..nres-1]: Linear(W, W)
    bres = unif(ks[3], (nr, W), float(W))
    wlast = unif(ks[4], (1, W), float(W))    # layers[nres+1]: Linear(W, 1)
    blast = unif(ks[5], (1,), float(W))
    if nres - 1 == 0:                        # padded layer must be inert
        wres = jnp.zeros_like(wres)
        bres = jnp.zeros_like(bres)
    return {"w0": w0, "b0": b0, "wres": wres, "bres": bres,
            "wlast": wlast, "blast": blast}


def pack_params(p, width):
    """Pre-transpose + block-diagonal lane packing (P batch groups per vreg)."""
    W = width
    P = 128 // W if (W < 128 and 128 % W == 0) else 1
    eye = jnp.eye(P, dtype=jnp.float32)
    wres_t = jnp.transpose(p["wres"], (0, 2, 1))             # (nr, W, W) in->out
    return {
        "pack": P,
        "w0_t": jnp.tile(p["w0"].reshape(1, W), (1, P)),                 # (1, PW)
        "b0_t": jnp.tile(p["b0"].reshape(1, W), (1, P)),                 # (1, PW)
        "wres_bd": jax.vmap(lambda w: jnp.kron(eye, w))(wres_t)
                      .astype(jnp.bfloat16),                             # (nr, PW, PW)
        "bres_t": jnp.tile(p["bres"].reshape(-1, 1, W), (1, 1, P)),      # (nr, 1, PW)
        "wlast_bd": jnp.kron(eye, p["wlast"].reshape(W, 1)),             # (PW, P)
        "blast_t": jnp.tile(p["blast"].reshape(1, 1), (1, P)),           # (1, P)
    }


def resnet_reference(x, p, nres):
    """Pure-JAX reference matching the PyTorch forward (bf16 residual matmuls
    with f32 accumulation — same numerics as the kernel)."""
    W = p["w0"].shape[0]
    h = jnp.maximum(x * p["w0"].reshape(1, W) + p["b0"][None, :], 0.0)
    wres_t = jnp.transpose(p["wres"], (0, 2, 1)).astype(jnp.bfloat16)
    for i in range(nres - 1):
        z = jnp.dot(h.astype(jnp.bfloat16), wres_t[i],
                    preferred_element_type=jnp.float32) + p["bres"][i][None, :]
        h = h + jnp.maximum(z, 0.0)
    return jnp.sum(h * p["wlast"], axis=-1, keepdims=True) + p["blast"][None, :]


if __name__ == "__main__":
    NRES, WIDTH, BATCH, TILE_B = 4, 32, 1024, 256

    key = jax.random.PRNGKey(0)
    kx, kp = jax.random.split(key)
    x = jax.random.normal(kx, (BATCH, 1), dtype=jnp.float32)
    raw = init_params(kp, NRES, WIDTH)
    packed = pack_params(raw, WIDTH)

    out = resnet_forward(x, packed, nres=NRES, width=WIDTH, tile_b=TILE_B)
    out = jax.block_until_ready(out)

    ref = resnet_reference(x, raw, NRES)
    assert out.shape == (BATCH, 1)
    # bf16 residual matmuls => loosened tolerance (kernel & reference use the
    # same bf16 weights/casts; remaining delta is f32 accumulation order).
    assert jnp.allclose(out, ref, atol=5e-3, rtol=5e-3), "mismatch vs reference"

    print("KERNEL_OK")
</pallas_src>

<mosaic_0001>
module attributes {stable_mosaic.version = 11 : i64} {
  func.func @resnet_kernel(%arg0: i32, %arg1: memref<64x128xf32, #tpu.memory_space<vmem>>, %arg2: memref<1x128xf32, #tpu.memory_space<vmem>>, %arg3: memref<1x128xf32, #tpu.memory_space<vmem>>, %arg4: memref<3x128x128xbf16, #tpu.memory_space<vmem>>, %arg5: memref<3x1x128xf32, #tpu.memory_space<vmem>>, %arg6: memref<128x4xf32, #tpu.memory_space<vmem>>, %arg7: memref<1x4xf32, #tpu.memory_space<vmem>>, %arg8: memref<64x4xf32, #tpu.memory_space<vmem>>) attributes {dimension_semantics = [#tpu.dimension_semantics<parallel>], iteration_bounds = array<i64: 4>, scalar_prefetch = 0 : i64, scratch_operands = 0 : i64, tpu.core_type = #tpu.core_type<tc>, window_params = [{transform_indices = @transform_0, window_bounds = array<i64: 64, 128>}, {pipeline_mode = #tpu.pipeline_mode<synchronous>, transform_indices = @transform_1, window_bounds = array<i64: 1, 128>}, {pipeline_mode = #tpu.pipeline_mode<synchronous>, transform_indices = @transform_2, window_bounds = array<i64: 1, 128>}, {pipeline_mode = #tpu.pipeline_mode<synchronous>, transform_indices = @transform_3, window_bounds = array<i64: 3, 128, 128>}, {pipeline_mode = #tpu.pipeline_mode<synchronous>, transform_indices = @transform_4, window_bounds = array<i64: 3, 1, 128>}, {pipeline_mode = #tpu.pipeline_mode<synchronous>, transform_indices = @transform_5, window_bounds = array<i64: 128, 4>}, {pipeline_mode = #tpu.pipeline_mode<synchronous>, transform_indices = @transform_6, window_bounds = array<i64: 1, 4>}, {transform_indices = @transform_7, window_bounds = array<i64: 64, 4>}]} {
    %c0 = arith.constant 0 : index
    %c0_0 = arith.constant 0 : index
    %0 = vector.load %arg1[%c0, %c0_0] : memref<64x128xf32, #tpu.memory_space<vmem>>, vector<64x128xf32>
    %c0_1 = arith.constant 0 : index
    %c0_2 = arith.constant 0 : index
    %1 = vector.load %arg2[%c0_1, %c0_2] : memref<1x128xf32, #tpu.memory_space<vmem>>, vector<1x128xf32>
    %2 = vector.broadcast %1 : vector<1x128xf32> to vector<64x128xf32>
    %3 = arith.mulf %0, %2 : vector<64x128xf32>
    %c0_3 = arith.constant 0 : index
    %c0_4 = arith.constant 0 : index
    %4 = vector.load %arg3[%c0_3, %c0_4] : memref<1x128xf32, #tpu.memory_space<vmem>>, vector<1x128xf32>
    %5 = vector.broadcast %4 : vector<1x128xf32> to vector<64x128xf32>
    %6 = arith.addf %3, %5 : vector<64x128xf32>
    %cst = arith.constant 0.000000e+00 : f32
    %7 = vector.broadcast %cst : f32 to vector<64x128xf32>
    %8 = arith.maximumf %6, %7 : vector<64x128xf32>
    %c0_5 = arith.constant 0 : index
    %c0_6 = arith.constant 0 : index
    %c0_7 = arith.constant 0 : index
    %9 = vector.load %arg4[%c0_5, %c0_6, %c0_7] : memref<3x128x128xbf16, #tpu.memory_space<vmem>>, vector<1x128x128xbf16>
    %10 = vector.shape_cast %9 : vector<1x128x128xbf16> to vector<128x128xbf16>
    %c0_8 = arith.constant 0 : index
    %c0_9 = arith.constant 0 : index
    %c0_10 = arith.constant 0 : index
    %11 = vector.load %arg5[%c0_8, %c0_9, %c0_10] : memref<3x1x128xf32, #tpu.memory_space<vmem>>, vector<1x1x128xf32>
    %12 = vector.shape_cast %11 : vector<1x1x128xf32> to vector<1x128xf32>
    %13 = arith.truncf %8 : vector<64x128xf32> to vector<64x128xbf16>
    %cst_11 = arith.constant dense<0.000000e+00> : vector<64x128xf32>
    %14 = tpu.matmul %13, %10, %cst_11 {dimension_numbers = #tpu.dot_dimension_numbers<[1], [0], [0], [1], [0, 0, 1, 1], [], []>} : vector<64x128xbf16>, vector<128x128xbf16>, vector<64x128xf32> -> vector<64x128xf32>
    %15 = vector.broadcast %12 : vector<1x128xf32> to vector<64x128xf32>
    %16 = arith.addf %14, %15 : vector<64x128xf32>
    %cst_12 = arith.constant 0.000000e+00 : f32
    %17 = vector.broadcast %cst_12 : f32 to vector<64x128xf32>
    %18 = arith.maximumf %16, %17 : vector<64x128xf32>
    %19 = arith.addf %8, %18 : vector<64x128xf32>
    %c1 = arith.constant 1 : index
    %c0_13 = arith.constant 0 : index
    %c0_14 = arith.constant 0 : index
    %20 = vector.load %arg4[%c1, %c0_13, %c0_14] : memref<3x128x128xbf16, #tpu.memory_space<vmem>>, vector<1x128x128xbf16>
    %21 = vector.shape_cast %20 : vector<1x128x128xbf16> to vector<128x128xbf16>
    %c1_15 = arith.constant 1 : index
    %c0_16 = arith.constant 0 : index
    %c0_17 = arith.constant 0 : index
    %22 = vector.load %arg5[%c1_15, %c0_16, %c0_17] : memref<3x1x128xf32, #tpu.memory_space<vmem>>, vector<1x1x128xf32>
    %23 = vector.shape_cast %22 : vector<1x1x128xf32> to vector<1x128xf32>
    %24 = arith.truncf %19 : vector<64x128xf32> to vector<64x128xbf16>
    %cst_18 = arith.constant dense<0.000000e+00> : vector<64x128xf32>
    %25 = tpu.matmul %24, %21, %cst_18 {dimension_numbers = #tpu.dot_dimension_numbers<[1], [0], [0], [1], [0, 0, 1, 1], [], []>} : vector<64x128xbf16>, vector<128x128xbf16>, vector<64x128xf32> -> vector<64x128xf32>
    %26 = vector.broadcast %23 : vector<1x128xf32> to vector<64x128xf32>
    %27 = arith.addf %25, %26 : vector<64x128xf32>
    %cst_19 = arith.constant 0.000000e+00 : f32
    %28 = vector.broadcast %cst_19 : f32 to vector<64x128xf32>
    %29 = arith.maximumf %27, %28 : vector<64x128xf32>
    %30 = arith.addf %19, %29 : vector<64x128xf32>
    %c2 = arith.constant 2 : index
    %c0_20 = arith.constant 0 : index
    %c0_21 = arith.constant 0 : index
    %31 = vector.load %arg4[%c2, %c0_20, %c0_21] : memref<3x128x128xbf16, #tpu.memory_space<vmem>>, vector<1x128x128xbf16>
    %32 = vector.shape_cast %31 : vector<1x128x128xbf16> to vector<128x128xbf16>
    %c2_22 = arith.constant 2 : index
    %c0_23 = arith.constant 0 : index
    %c0_24 = arith.constant 0 : index
    %33 = vector.load %arg5[%c2_22, %c0_23, %c0_24] : memref<3x1x128xf32, #tpu.memory_space<vmem>>, vector<1x1x128xf32>
    %34 = vector.shape_cast %33 : vector<1x1x128xf32> to vector<1x128xf32>
    %35 = arith.truncf %30 : vector<64x128xf32> to vector<64x128xbf16>
    %cst_25 = arith.constant dense<0.000000e+00> : vector<64x128xf32>
    %36 = tpu.matmul %35, %32, %cst_25 {dimension_numbers = #tpu.dot_dimension_numbers<[1], [0], [0], [1], [0, 0, 1, 1], [], []>} : vector<64x128xbf16>, vector<128x128xbf16>, vector<64x128xf32> -> vector<64x128xf32>
    %37 = vector.broadcast %34 : vector<1x128xf32> to vector<64x128xf32>
    %38 = arith.addf %36, %37 : vector<64x128xf32>
    %cst_26 = arith.constant 0.000000e+00 : f32
    %39 = vector.broadcast %cst_26 : f32 to vector<64x128xf32>
    %40 = arith.maximumf %38, %39 : vector<64x128xf32>
    %41 = arith.addf %30, %40 : vector<64x128xf32>
    %c0_27 = arith.constant 0 : index
    %c0_28 = arith.constant 0 : index
    %42 = vector.load %arg6[%c0_27, %c0_28] : memref<128x4xf32, #tpu.memory_space<vmem>>, vector<128x4xf32>
    %cst_29 = arith.constant dense<0.000000e+00> : vector<64x4xf32>
    %43 = tpu.matmul %41, %42, %cst_29 {dimension_numbers = #tpu.dot_dimension_numbers<[1], [0], [0], [1], [0, 0, 1, 1], [], []>} : vector<64x128xf32>, vector<128x4xf32>, vector<64x4xf32> -> vector<64x4xf32>
    %c0_30 = arith.constant 0 : index
    %c0_31 = arith.constant 0 : index
    %44 = vector.load %arg7[%c0_30, %c0_31] : memref<1x4xf32, #tpu.memory_space<vmem>>, vector<1x4xf32>
    %45 = vector.broadcast %44 : vector<1x4xf32> to vector<64x4xf32>
    %46 = arith.addf %43, %45 : vector<64x4xf32>
    %c0_32 = arith.constant 0 : index
    %c0_33 = arith.constant 0 : index
    %47 = vector.load %arg8[%c0_32, %c0_33] : memref<64x4xf32, #tpu.memory_space<vmem>>, vector<64x4xf32>
    tpu.vector_store %arg8[%c0_32, %c0_33], %46 {strides = array<i32>} : memref<64x4xf32, #tpu.memory_space<vmem>>, vector<64x4xf32>,
    return
  }
  func.func @transform_0(%arg0: i32) -> (i32, i32) {
    %c0_i32 = arith.constant 0 : i32
    %c0_i32_0 = arith.constant 0 : i32
    return %arg0, %c0_i32 : i32, i32
  }
  func.func @transform_1(%arg0: i32) -> (i32, i32) {
    %c0_i32 = arith.constant 0 : i32
    %c0_i32_0 = arith.constant 0 : i32
    %c0_i32_1 = arith.constant 0 : i32
    return %c0_i32, %c0_i32_0 : i32, i32
  }
  func.func @transform_2(%arg0: i32) -> (i32, i32) {
    %c0_i32 = arith.constant 0 : i32
    %c0_i32_0 = arith.constant 0 : i32
    %c0_i32_1 = arith.constant 0 : i32
    return %c0_i32, %c0_i32_0 : i32, i32
  }
  func.func @transform_3(%arg0: i32) -> (i32, i32, i32) {
    %c0_i32 = arith.constant 0 : i32
    %c0_i32_0 = arith.constant 0 : i32
    %c0_i32_1 = arith.constant 0 : i32
    %c0_i32_2 = arith.constant 0 : i32
    return %c0_i32, %c0_i32_0, %c0_i32_1 : i32, i32, i32
  }
  func.func @transform_4(%arg0: i32) -> (i32, i32, i32) {
    %c0_i32 = arith.constant 0 : i32
    %c0_i32_0 = arith.constant 0 : i32
    %c0_i32_1 = arith.constant 0 : i32
    %c0_i32_2 = arith.constant 0 : i32
    return %c0_i32, %c0_i32_0, %c0_i32_1 : i32, i32, i32
  }
  func.func @transform_5(%arg0: i32) -> (i32, i32) {
    %c0_i32 = arith.constant 0 : i32
    %c0_i32_0 = arith.constant 0 : i32
    %c0_i32_1 = arith.constant 0 : i32
    return %c0_i32, %c0_i32_0 : i32, i32
  }
  func.func @transform_6(%arg0: i32) -> (i32, i32) {
    %c0_i32 = arith.constant 0 : i32
    %c0_i32_0 = arith.constant 0 : i32
    %c0_i32_1 = arith.constant 0 : i32
    return %c0_i32, %c0_i32_0 : i32, i32
  }
  func.func @transform_7(%arg0: i32) -> (i32, i32) {
    %c0_i32 = arith.constant 0 : i32
    %c0_i32_0 = arith.constant 0 : i32
    return %arg0, %c0_i32 : i32, i32
  }
}

</mosaic_0001>

<bundles_post_ra>
// kernel: tpu_custom_call.1
= control target key start
LH: loop header
LB: loop body
LE: loop exit
PB: predicated region body
PF: predicated region fallthrough
CT: control target
= control target key end

     0   :  { %12 = vsyncpa [#allocation3], 0  ;;  %s1792_s0 = inlined_call_operand.hbm [shape: f32[256,128], index: 0, kind: input, shape index: {}]   ;;  %s1793_s1 = inlined_call_operand.vmem [shape: f32[1,128], index: 1, kind: input, shape index: {}]   ;;  %s1794_s2 = inlined_call_operand.vmem [shape: f32[1,128], index: 2, kind: input, shape index: {}]   ;;  %s1795_s3 = inlined_call_operand.hbm [shape: bf16[3,128,128], index: 3, kind: input, shape index: {}]   ;;  %s1796_s4 = inlined_call_operand.vmem [shape: f32[3,1,128], index: 4, kind: input, shape index: {}]   ;;  %s1797_s5 = inlined_call_operand.vmem [shape: f32[128,4], index: 5, kind: input, shape index: {}]   ;;  %s1798_s6 = inlined_call_operand.vmem [shape: f32[1,4], index: 6, kind: input, shape index: {}]   ;;  %s1799_s7 = inlined_call_operand.vmem [shape: f32[256,4], index: 7, kind: output, shape index: {}]  }
   0x1   :  { %14 = vsyncpa [#allocation3 + $0x1], 0 }
   0x2   :  { %15 = vsyncpa [#allocation5], 0  ;;  %s1491_s24 = smov 0   ;;  %s1493_s25 = smov 0  }
   0x3   :  { %s1495_s26 = smov 0   ;;  %s1497_s27 = smov 0  }
   0x4 LB: > { %s1049_s28 = sadd.s32 4294967295, %s1443_s27   ;;  %p41_p0 = scmp.ne.s32.totalorder %s1435_s25, %s1431_s24  ;;  %s1443_s27 = sphi %s1497_s27, %s1815_s27   ;;  %s1439_s26 = sphi %s1495_s26, %s1814_s26   ;;  %s1435_s25 = sphi %s1493_s25, %s1813_s25   ;;  %s1431_s24 = sphi %s1491_s24, %s1812_s24  }
   0x5   : > { %p1513_p1 = scmp.eq.s32.totalorder %s1049_s28, 0  ;;  %p1051_p2 = scmp.ge.s32.totalorder %s1443_s27, 1 }
   0x6   : > { %p204_p3 = scmp.lt.s32.totalorder %s1443_s27, 5  ;;  %s1445_s9 = smov [#allocation4]  }
   0x7   : > { %s1804_s29 = scalar_select %p1513_p1, 1, 0 }
   0x8   : > { %p1521_p4 = por %p1513_p1, %p41_p0  ;;  %p1525_p5 = pnand %p1051_p2, %p204_p3 }
   0x9   : > { %s222_s10 = sshll.u32 %s1445_s9, 4  ;;  %s1538_s12 = sadd.s32 1, %s1443_s27   ;;  %s223_s10 = int_to_ptr.vmem [resolvable:$true] %s222_s10 }
   0xa   : > { %s1805_s30 = scalar_select %p1521_p4, 1, 0 }
   0xb   : > { %s1806_s8 = scalar_select %p1525_p5, 1, 0 }
   0xc   : > { %p1279_p6 = pneg %p1525_p5  ;;  %s28_s13 = sadd.s32 1, %s1439_s26 }
   0xd   : > { %s25_s14 = ssub.s32 %s1443_s27, %s1538_s12  ;;  %s1362_s15 = scalar_lea.vmem %s223_s10, 3072 }
   0xe   : > { %p1533_p7 = pnand %p1279_p6, %p1513_p1  ;;  %p1363_p9 = scmp.ne.s32.totalorder %s223_s10, %s1362_s15 }
   0xf   : > { %p1370_p12 = scmp.lt.s32.totalorder %s223_s10, %s223_s10  ;;  %p1371_p13 = scmp.lt.s32.totalorder %s1362_s15, %s1362_s15 }
  0x10   : > { %p1353_p8 = pneg %p1533_p7 }
  0x11   : > { %p1372_p0 = por %p1371_p13, %p1370_p12 }
  0x12   : > { %p1365_p10 = pnand %p1363_p9, %p1353_p8 }
  0x14   : > { %p1366_p11 = pneg %p1365_p10 }
  0x16   : > { %p1373_p2 = pnand %p1372_p0, %p1366_p11 }
  0x18   : > { %1376 = shalt.err (!%p1373_p2)
}
  0x19   : > { %s1446_s16 = smov 64   ;;  %s1447_s17 = smov 4  }
  0x1a   : > { %1282 = dma.hbm_to_vmem [thread:$0]  (!%p1533_p7), %s1795_s3, 3072, %s223_s10, [#allocation5], %s1446_s16, %s1446_s16, %s1447_s17  }
  0x1b   : > { %p26_p3 = scmp.eq.s32.totalorder %s25_s14, 0  ;;  %p35_p6 = scmp.ne.s32.totalorder %s1439_s26, %s1435_s25 }
  0x1c   : > { %p36_p8 = scmp.eq.s32.totalorder %s1443_s27, 0  ;;  %p1288_p9 = scmp.lt.s32.totalorder %s1443_s27, 4 }
  0x1d   : > { %s1555_s20 = scalar_select %p26_p3, %s1439_s26, %s28_s13  }
  0x1e   : > { %p37_p10 = por %p36_p8, %p35_p6  ;;  %s245_s21 = sand.u32 1, %s1439_s26  }
  0x1f   : > { %s1054_s22 = sshll.u32 %s245_s21, 6  ;;  %s1096_s23 = sshll.u32 %s1443_s27, 10 }
  0x20   : > { %s1562_s15 = scalar_lea.hbm %s1792_s0, %s1096_s23  ;;  %s249_s11 = scalar_lea.vmem [#allocation2], %s1054_s22 }
  0x21   : > { %s256_s10 = sshll.u32 %s249_s11, 4  ;;  %p1566_p7 = pnand %p1288_p9, %p37_p10  ;;  %s1564_s10 = int_to_ptr.vmem [resolvable:$true] %s256_s10 }
  0x22   : > { %s1570_s13 = scalar_lea.sflag [#allocation3], %s245_s21  ;;  %s1377_s16 = scalar_lea.hbm %s1562_s15, 1024 }
  0x23   : > { %p1378_p11 = scmp.ne.s32.totalorder %s1562_s15, %s1377_s16  ;;  %p1379_p12 = pneg %p1566_p7 }
  0x24   : > { %s1382_s19 = scalar_lea.hbm %s1792_s0, 4096  ;;  %p1383_p2 = scmp.lt.s32.totalorder %s1562_s15, %s1792_s0 }
  0x25   : > { %p1380_p13 = pnand %p1379_p12, %p1378_p11  ;;  %p1384_p3 = scmp.lt.s32.totalorder %s1382_s19, %s1377_s16 }
  0x27   : > { %p1381_p0 = pneg %p1380_p13  ;;  %p1385_p6 = por %p1384_p3, %p1383_p2 }
  0x29   : > { %p1386_p8 = pnand %p1385_p6, %p1381_p0 }
  0x2b   : > { %1389 = shalt.err (!%p1386_p8)
}
  0x2c   : > { %s1390_s21 = scalar_lea.vmem %s1564_s10, 1024  ;;  %s1448_s24 = smov [#allocation2]  }
  0x2d   : > { %p1391_p9 = scmp.ne.s32.totalorder %s1564_s10, %s1390_s21  ;;  %s1395_s9 = sshll.u32 %s1448_s24, 4  ;;  %s1396_s9 = int_to_ptr.vmem [resolvable:$false] %s1395_s9 }
  0x2e   : > { %s1397_s11 = scalar_lea.vmem %s1396_s9, 2048  ;;  %p1398_p13 = scmp.lt.s32.totalorder %s1564_s10, %s1396_s9 }
  0x2f   : > { %p1393_p10 = pnand %p1391_p9, %p1379_p12  ;;  %p1399_p1 = scmp.lt.s32.totalorder %s1397_s11, %s1390_s21 }
  0x31   : > { %p1394_p11 = pneg %p1393_p10  ;;  %p1400_p4 = por %p1399_p1, %p1398_p13 }
  0x33   : > { %p1401_p5 = pnand %p1400_p4, %p1394_p11 }
  0x35   : > { %1404 = shalt.err (!%p1401_p5)
}
  0x36   : > { %s1449_s16 = smov 128   ;;  %s1450_s17 = smov 8  }
  0x37   : > { %1286 = dma.hbm_to_vmem [thread:$0]  (!%p1566_p7), %s1562_s15, 1024, %s1564_s10, %s1570_s13, %s1449_s16, %s1449_s16, %s1450_s17  }
  0x38   : > { %p1809_p12 = scmp.ne.s32.totalorder %s1806_s8, 0 }
  0x39   : > { %s270_s18 = sand.u32 (!%p1809_p12), 1, %s1435_s25   ;;  %p1810_p1 = scmp.ne.s32.totalorder (!%p1809_p12), %s1805_s30, 0 }
  0x3a   : > { %268 = sbr.rel (%p1809_p12) target bundleno = 931 (0x3a3), region = 48  ;;  %s1058_s19 = sshll.u32 (!%p1809_p12), %s270_s18, 6 }
  0x3b   : > { %s271_s22 = scalar_lea.sflag (!%p1809_p12), [#allocation3], %s270_s18  ;;  %s1594_s23 = scalar_lea.vmem (!%p1809_p12), [#allocation2], %s1058_s19 }
  0x3f   : > { %1422 = dma.done.wait (%p1810_p1), %s271_s22, 1024  }
  0x40   : > { %1424 = vsyncadd (%p1810_p1), %s271_s22, 4294966272  ;;  %p1811_p4 = scmp.ne.s32.totalorder %s1804_s29, 0 }
  0x42   : > { %1426 = dma.done.wait (%p1811_p4), [#allocation5], 3072  }
  0x43   : > { %1428 = vsyncadd (%p1811_p4), [#allocation5], 4294964224  ;;  %v1327_v0 = vld [vmem:[#allocation4 + $0x38] sm:$0xff]   ;;  %v1328_v1 = vld [vmem:[#allocation4 + $0x30] sm:$0xff]   ;;  %s1060_s24 = sshll.u32 %s1049_s28, 3  ;;  %vm963_vm0 = vcmask 31744  }
  0x44   : > { %1157 = vmatprep.subr.bf16.mxu0 %v1327_v0  ;;  %v1329_v2 = vld [vmem:[#allocation4 + $0x28] sm:$0xff]   ;;  %v1330_v3 = vld [vmem:[#allocation4 + $0x20] sm:$0xff]   ;;  %v1331_v10 = vld [vmem:[#allocation4 + $0x18] sm:$0xff]   ;;  %p311_p5 = scmp.lt.s32.totalorder %s1060_s24, 31 }
  0x45   : > { %1158 = vmatpush3.bf16.msra.mxu0 %v1327_v0  ;;  %v317_v4 = vld [vmem:[%s1594_s23] sm:$0xff]  ;;  %v318_v5 = vld [vmem:[%s1594_s23 + $0x8] sm:$0xff]  ;;  %v1335_v13 = vld [vmem:[#allocation4 + $0x78] sm:$0xff]  }
  0x46   : > { %1159 = vmatprep.subr.bf16.mxu0 %v1328_v1  ;;  %v1062_v6 = vld [vmem:[%s1793_s1] ss:$0 sm:$0xff]  ;;  %v319_v16 = vld [vmem:[%s1594_s23 + $0x10] sm:$0xff]  ;;  %v320_v19 = vld [vmem:[%s1594_s23 + $0x18] sm:$0xff]  ;;  %1181 = vmatprep.subr.bf16.mxu1 %v1335_v13  ;;  %s1817_s24 = smov (!%p311_p5, %s1060_s24), 31 }
  0x47   : > { %v332_v7 = vmul.f32 %v1062_v6, %v317_v4  ;;  %v333_v8 = vmul.f32 %v1062_v6, %v318_v5  ;;  %v1063_v9 = vld [vmem:[%s1794_s2] ss:$0 sm:$0xff]  ;;  %v1336_v17 = vld [vmem:[#allocation4 + $0x70] sm:$0xff]   ;;  %v322_v22 = vld [vmem:[%s1594_s23 + $0x28] sm:$0xff]  ;;  %1182 = vmatpush3.bf16.msra.mxu1 %v1335_v13  ;;  %v334_v25 = vmul.f32 %v1062_v6, %v319_v16  ;;  %v335_v26 = vmul.f32 %v1062_v6, %v320_v19  ;;  %s1061_s9 = sshll.u32 %s1817_s24, 3 }
  0x48   : > { %v1332_v18 = vld [vmem:[#allocation4 + $0x10] sm:$0xff]   ;;  %v321_v21 = vld [vmem:[%s1594_s23 + $0x20] sm:$0xff]  ;;  %1183 = vmatprep.subr.bf16.mxu1 %v1336_v17  ;;  %v1337_v23 = vld [vmem:[#allocation4 + $0x68] sm:$0xff]   ;;  %v337_v29 = vmul.f32 %v1062_v6, %v322_v22  ;;  %s314_s19 = scalar_lea.vmem %s1799_s7, %s1061_s9 }
  0x49   : > { %1160 = vmatpush3.bf16.msra.mxu0 %v1328_v1  ;;  %v1612_v11 = vadd.f32 %v1063_v9, %v332_v7  ;;  %v1614_v12 = vadd.f32 %v1063_v9, %v333_v8  ;;  %v1333_v24 = vld [vmem:[#allocation4 + $0x8] sm:$0xff]   ;;  %v1338_v27 = vld [vmem:[#allocation4 + $0x60] sm:$0xff]   ;;  %v336_v28 = vmul.f32 %v1062_v6, %v321_v21  ;;  %v323_v30 = vld [vmem:[%s1594_s23 + $0x30] sm:$0xff]  ;;  %v1628_v32 = vadd.f32 %v1063_v9, %v334_v25 }
  0x4a   : > { %1161 = vmatprep.subr.bf16.mxu0 %v1329_v2  ;;  %v324_v31 = vld [vmem:[%s1594_s23 + $0x38] sm:$0xff]  ;;  %v1630_v33 = vadd.f32 %v1063_v9, %v335_v26  ;;  %v1634_v35 = vadd.f32 %v1063_v9, %v337_v29  ;;  %v1334_v36 = vld [vmem:[#allocation4] sm:$0xff]   ;;  %v338_v39 = vmul.f32 %v1062_v6, %v323_v30  ;;  %v1340_v51 = vld [vmem:[#allocation4 + $0x50] sm:$0xff]  }
  0x4b   : > { %v355_v14 = vmax.f32 %v1612_v11, 0.0  ;;  %v356_v15 = vmax.f32 %v1614_v12, 0.0  ;;  %1184 = vmatpush3.bf16.msra.mxu1 %v1336_v17  ;;  %v1632_v34 = vadd.f32 %v1063_v9, %v336_v28  ;;  %v357_v37 = vmax.f32 %v1628_v32, 0.0  ;;  %v1339_v50 = vld [vmem:[#allocation4 + $0x58] sm:$0xff]   ;;  %v1341_v52 = vld [vmem:[#allocation4 + $0x48] sm:$0xff]   ;;  %v1342_v53 = vld [vmem:[#allocation4 + $0x40] sm:$0xff]  }
  0x4c   : > { %1185 = vmatprep.subr.bf16.mxu1 %v1337_v23  ;;  %v358_v38 = vmax.f32 %v1630_v33, 0.0  ;;  %v339_v40 = vmul.f32 %v1062_v6, %v324_v31  ;;  %v360_v42 = vmax.f32 %v1634_v35, 0.0  ;;  %v1642_v44 = vadd.f32 %v1063_v9, %v338_v39  ;;  %v1343_v54 = vld [vmem:[#allocation4 + $0xb8] sm:$0xff]   ;;  %v1344_v55 = vld [vmem:[#allocation4 + $0xb0] sm:$0xff]   ;;  %v1345_v56 = vld [vmem:[#allocation4 + $0xa8] sm:$0xff]  }
  0x4d   : > { %1162 = vmatpush3.bf16.msra.mxu0 %v1329_v2  ;;  %v380_v20 = vpack.c.bf16 %v356_v15, %v355_v14  ;;  %v359_v41 = vmax.f32 %v1632_v34, 0.0  ;;  %v1346_v57 = vld [vmem:[#allocation4 + $0xa0] sm:$0xff]   ;;  %v1347_v31 = vld [vmem:[#allocation4 + $0x98] sm:$0xff]   ;;  %v1348_v32 = vld [vmem:[#allocation4 + $0x90] sm:$0xff]  }
  0x4e   : > { %1163 = vmatprep.subr.bf16.mxu0 %v1330_v3  ;;  %v381_v43 = vpack.c.bf16 %v358_v38, %v357_v37  ;;  %v1644_v45 = vadd.f32 %v1063_v9, %v339_v40  ;;  %v361_v47 = vmax.f32 %v1642_v44, 0.0  ;;  %v1064_v59 = vld [vmem:[%s1796_s4] ss:$0 sm:$0xff]  ;;  %v1349_v33 = vld [vmem:[#allocation4 + $0x88] sm:$0xff]   ;;  %v850_v35 = vld [vmem:[%s1797_s5 + $0x78] sm:$0xff] }
  0x4f   : > { %1173 = vmatprep.mubr.bf16.mxu0 %v380_v20  ;;  %1186 = vmatpush3.bf16.msra.mxu1 %v1337_v23  ;;  %v382_v46 = vpack.c.bf16 %v360_v42, %v359_v41  ;;  %v1350_v34 = vld [vmem:[#allocation4 + $0x80] sm:$0xff]   ;;  %v846_v39 = vld [vmem:[%s1797_s5 + $0x58] sm:$0xff]  ;;  %v845_v40 = vld [vmem:[%s1797_s5 + $0x50] sm:$0xff] }
  0x50   : > { %1187 = vmatprep.subr.bf16.mxu1 %v1338_v27  ;;  %v362_v48 = vmax.f32 %v1644_v45, 0.0  ;;  %v841_v44 = vld [vmem:[%s1797_s5 + $0x30] sm:$0xff] }
  0x51   : > { %1164 = vmatpush3.bf16.msra.mxu0 %v1330_v3 }
  0x52   : > { %1165 = vmatprep.subr.bf16.mxu0 %v1331_v10  ;;  %v383_v49 = vpack.c.bf16 %v362_v48, %v361_v47 }
  0x53   : > { %1188 = vmatpush3.bf16.msra.mxu1 %v1338_v27 }
  0x54   : > { %1189 = vmatprep.subr.bf16.mxu1 %v1339_v50 }
  0x55   : > { %1166 = vmatpush3.bf16.msra.mxu0 %v1331_v10 }
  0x56   : > { %1167 = vmatprep.subr.bf16.mxu0 %v1332_v18 }
  0x57   : > { %1190 = vmatpush3.bf16.msra.mxu1 %v1339_v50 }
  0x58   : > { %1191 = vmatprep.subr.bf16.mxu1 %v1340_v51 }
  0x59   : > { %1168 = vmatpush3.bf16.msra.mxu0 %v1332_v18 }
  0x5a   : > { %1169 = vmatprep.subr.bf16.mxu0 %v1333_v24 }
  0x5b   : > { %1192 = vmatpush3.bf16.msra.mxu1 %v1340_v51 }
  0x5c   : > { %1193 = vmatprep.subr.bf16.mxu1 %v1341_v52 }
  0x5d   : > { %1170 = vmatpush3.bf16.msra.mxu0 %v1333_v24 }
  0x5e   : > { %1171 = vmatprep.subr.bf16.mxu0 %v1334_v36 }
  0x5f   : > { %1194 = vmatpush3.bf16.msra.mxu1 %v1341_v52 }
  0x60   : > { %1195 = vmatprep.subr.bf16.mxu1 %v1342_v53 }
  0x61   : > { %1172 = vmatpush3.bf16.msra.mxu0 %v1334_v36  ;;  %v849_v36 = vld [vmem:[%s1797_s5 + $0x70] sm:$0xff] }
  0x62   : > { %1205 = vmatprep.subr.bf16.mxu0 %v1343_v54 }
  0x63   : > { %1196 = vmatpush3.bf16.msra.mxu1 %v1342_v53 }
  0x64   : > { %1174 = vmatmul.mubr.bf16.vlgmr.msra.gmra.mxu0 %v381_v43  ;;  %1229 = vmatprep.subr.mxu1 %v850_v35  ;;  %v842_v43 = vld [vmem:[%s1797_s5 + $0x38] sm:$0xff] }
  0x65   : > { %1177 = vmatprep.mubr.bf16.mxu0 %v382_v46  ;;  %1206 = vmatpush3.bf16.msra.mxu0 %v1343_v54  ;;  %v1074_v46 = vld [vmem:[%s1796_s4 + $0x1] ss:$0 sm:$0xff] }
  0x66   : > { %1207 = vmatprep.subr.bf16.mxu0 %v1344_v55 }
  0x69   : > { %1208 = vmatpush3.bf16.msra.mxu0 %v1344_v55 }
  0x6a   : > { %1209 = vmatprep.subr.bf16.mxu0 %v1345_v56 }
  0x6c   : > { %1178 = vmatmul.mubr.bf16.gmra.mxu0 %v383_v49 }
  0x6d   : > { %1210 = vmatpush3.bf16.msra.mxu0 %v1345_v56 }
  0x6e   : > { %1211 = vmatprep.subr.bf16.mxu0 %v1346_v57 }
  0x71   : > { %1212 = vmatpush3.bf16.msra.mxu0 %v1346_v57 }
  0x72   : > { %1213 = vmatprep.subr.bf16.mxu0 %v1347_v31 }
  0x75   : > { %1214 = vmatpush3.bf16.msra.mxu0 %v1347_v31 }
  0x76   : > { %1215 = vmatprep.subr.bf16.mxu0 %v1348_v32 }
  0x79   : > { %1216 = vmatpush3.bf16.msra.mxu0 %v1348_v32 }
  0x7a   : > { %1217 = vmatprep.subr.bf16.mxu0 %v1349_v33 }
  0x7d   : > { %1218 = vmatpush3.bf16.msra.mxu0 %v1349_v33 }
  0x7e   : > { %1219 = vmatprep.subr.bf16.mxu0 %v1350_v34 }
  0x81   : > { %1220 = vmatpush3.bf16.msra.mxu0 %v1350_v34 }
 0x124   : > { %v1175_v58 = vpop.f32.mrf.mxu0 }
 0x125   : > { %v481_v62 = vadd.f32 %v1175_v58, %v1064_v59 }
 0x126   : > { %v472_v60 = vpop.f32.mrf.mxu0 }
 0x127   : > { %v473_v61 = vadd.f32 %v1064_v59, %v472_v60  ;;  %v505_v5 = vmax.f32 %v481_v62, 0.0 }
 0x128   : > { %v1176_v63 = vpop.f32.mrf.mxu0 }
 0x129   : > { %v484_v0 = vadd.f32 %v1176_v63, %v1064_v59  ;;  %v503_v2 = vmax.f32 %v473_v61, 0.0  ;;  %v1669_v17 = vadd.f32 %v505_v5, %v357_v37  ;;  %v848_v37 = vld [vmem:[%s1797_s5 + $0x68] sm:$0xff] }
 0x12a   : > { %v475_v1 = vpop.f32.mrf.mxu0 }
 0x12b   : > { %v506_v3 = vmax.f32 %v484_v0, 0.0  ;;  %v476_v4 = vadd.f32 %v1064_v59, %v475_v1  ;;  %v1661_v13 = vadd.f32 %v503_v2, %v355_v14 }
 0x12c   : > { %v1179_v6 = vpop.f32.mrf.mxu0 }
 0x12d   : > { %v504_v7 = vmax.f32 %v476_v4, 0.0  ;;  %v1657_v8 = vadd.f32 %v506_v3, %v358_v38  ;;  %v497_v18 = vadd.f32 %v1179_v6, %v1064_v59  ;;  %v847_v38 = vld [vmem:[%s1797_s5 + $0x60] sm:$0xff] }
 0x12e   : > { %v488_v9 = vpop.f32.mrf.mxu0 }
 0x12f   : > { %v489_v10 = vadd.f32 %v1064_v59, %v488_v9  ;;  %v1665_v16 = vadd.f32 %v504_v7, %v356_v15  ;;  %v539_v11 = vpack.c.bf16 %v1657_v8, %v1669_v17  ;;  %v509_v12 = vmax.f32 %v497_v18, 0.0 }
 0x130   : > { %v1180_v19 = vpop.f32.mrf.mxu0 }
 0x131   : > { %v500_v20 = vadd.f32 %v1180_v19, %v1064_v59  ;;  %v538_v21 = vpack.c.bf16 %v1665_v16, %v1661_v13  ;;  %v507_v14 = vmax.f32 %v489_v10, 0.0  ;;  %v1687_v28 = vadd.f32 %v509_v12, %v361_v47  ;;  %v835_v12 = vld [vmem:[%s1797_s5] sm:$0xff] }
 0x132   : > { %v491_v22 = vpop.f32.mrf.mxu0 }
 0x133   : > { %v510_v23 = vmax.f32 %v500_v20, 0.0  ;;  %v492_v24 = vadd.f32 %v1064_v59, %v491_v22  ;;  %1197 = vmatprep.mubr.bf16.mxu1 %v538_v21  ;;  %v1679_v26 = vadd.f32 %v507_v14, %v359_v41  ;;  %v844_v41 = vld [vmem:[%s1797_s5 + $0x48] sm:$0xff]  ;;  %v838_v14 = vld [vmem:[%s1797_s5 + $0x18] sm:$0xff] }
 0x134   : > { %1198 = vmatmul.mubr.bf16.vlgmr.msra.gmra.mxu1 %v539_v11  ;;  %v840_v22 = vld [vmem:[%s1797_s5 + $0x28] sm:$0xff]  ;;  %v839_v11 = vld [vmem:[%s1797_s5 + $0x20] sm:$0xff] }
 0x135   : > { %v508_v15 = vmax.f32 %v492_v24, 0.0  ;;  %v1675_v25 = vadd.f32 %v510_v23, %v362_v48  ;;  %1230 = vmatpush3.msra.mxu1 %v850_v35  ;;  %v837_v23 = vld [vmem:[%s1797_s5 + $0x10] sm:$0xff]  ;;  %v836_v24 = vld [vmem:[%s1797_s5 + $0x8] sm:$0xff] }
 0x136   : > { %1231 = vmatprep.subr.mxu1 %v849_v36 }
 0x137   : > { %v1683_v27 = vadd.f32 %v508_v15, %v360_v42  ;;  %v541_v30 = vpack.c.bf16 %v1675_v25, %v1687_v28  ;;  %1232 = vmatpush3.msra.mxu1 %v849_v36  ;;  %v843_v42 = vld [vmem:[%s1797_s5 + $0x40] sm:$0xff] }
 0x138   : > { %1233 = vmatprep.subr.mxu1 %v848_v37 }
 0x139   : > { %v540_v29 = vpack.c.bf16 %v1683_v27, %v1679_v26  ;;  %1234 = vmatpush3.msra.mxu1 %v848_v37 }
 0x13a   : > { %1235 = vmatprep.subr.mxu1 %v847_v38 }
 0x13b   : > { %1201 = vmatprep.mubr.bf16.mxu1 %v540_v29  ;;  %1236 = vmatpush3.msra.mxu1 %v847_v38 }
 0x13c   : > { %1202 = vmatmul.mubr.bf16.gmra.mxu1 %v541_v30  ;;  %1237 = vmatprep.subr.mxu1 %v846_v39 }
 0x13d   : > { %1238 = vmatpush3.msra.mxu1 %v846_v39 }
 0x13e   : > { %1239 = vmatprep.subr.mxu1 %v845_v40 }
 0x13f   : > { %1240 = vmatpush3.msra.mxu1 %v845_v40 }
 0x140   : > { %1241 = vmatprep.subr.mxu1 %v844_v41 }
 0x141   : > { %1242 = vmatpush3.msra.mxu1 %v844_v41 }
 0x142   : > { %1243 = vmatprep.subr.mxu1 %v843_v42 }
 0x143   : > { %1244 = vmatpush3.msra.mxu1 %v843_v42 }
 0x144   : > { %1245 = vmatprep.subr.mxu1 %v842_v43 }
 0x145   : > { %1246 = vmatpush3.msra.mxu1 %v842_v43 }
 0x146   : > { %1247 = vmatprep.subr.mxu1 %v841_v44 }
 0x147   : > { %1248 = vmatpush3.msra.mxu1 %v841_v44 }
 0x148   : > { %1249 = vmatprep.subr.mxu1 %v840_v22 }
 0x149   : > { %1250 = vmatpush3.msra.mxu1 %v840_v22 }
 0x14a   : > { %1251 = vmatprep.subr.mxu1 %v839_v11 }
 0x14b   : > { %1252 = vmatpush3.msra.mxu1 %v839_v11 }
 0x14c   : > { %1253 = vmatprep.subr.mxu1 %v838_v14 }
 0x14d   : > { %1254 = vmatpush3.msra.mxu1 %v838_v14 }
 0x14e   : > { %1255 = vmatprep.subr.mxu1 %v837_v23 }
 0x14f   : > { %1256 = vmatpush3.msra.mxu1 %v837_v23 }
 0x150   : > { %1257 = vmatprep.subr.mxu1 %v836_v24 }
 0x151   : > { %1258 = vmatpush3.msra.mxu1 %v836_v24 }
 0x152   : > { %1259 = vmatprep.subr.mxu1 %v835_v12 }
 0x153   : > { %1260 = vmatpush3.msra.mxu1 %v835_v12 }
 0x1f4   : > { %v1199_v45 = vpop.f32.mrf.mxu1 }
 0x1f5   : > { %v639_v49 = vadd.f32 %v1199_v45, %v1074_v46 }
 0x1f6   : > { %v630_v47 = vpop.f32.mrf.mxu1 }
 0x1f7   : > { %v631_v48 = vadd.f32 %v1074_v46, %v630_v47  ;;  %v663_v56 = vmax.f32 %v639_v49, 0.0 }
 0x1f8   : > { %v1200_v50 = vpop.f32.mrf.mxu1 }
 0x1f9   : > { %v642_v51 = vadd.f32 %v1200_v50, %v1074_v46  ;;  %v661_v53 = vmax.f32 %v631_v48, 0.0  ;;  %v671_v0 = vadd.f32 %v663_v56, %v1669_v17 }
 0x1fa   : > { %v633_v52 = vpop.f32.mrf.mxu1 }
 0x1fb   : > { %v664_v54 = vmax.f32 %v642_v51, 0.0  ;;  %v634_v55 = vadd.f32 %v1074_v46, %v633_v52  ;;  %v669_v61 = vadd.f32 %v661_v53, %v1661_v13 }
 0x1fc   : > { %v1203_v57 = vpop.f32.mrf.mxu1 }
 0x1fd   : > { %v662_v58 = vmax.f32 %v634_v55, 0.0  ;;  %v1727_v59 = vadd.f32 %v664_v54, %v1657_v8  ;;  %v655_v1 = vadd.f32 %v1203_v57, %v1074_v46  ;;  %v1093_v57 = vld [vmem:[%s1798_s6] ss:$0 sm:$0xff] }
 0x1fe   : > { %v646_v60 = vpop.f32.mrf.mxu1 }
 0x1ff   : > { %v670_v62 = vadd.f32 %v662_v58, %v1665_v16  ;;  %v647_v63 = vadd.f32 %v1074_v46, %v646_v60  ;;  %v697_v5 = vpack.c.bf16 %v1727_v59, %v671_v0  ;;  %v667_v8 = vmax.f32 %v655_v1, 0.0 }
 0x200   : > { %v1204_v2 = vpop.f32.mrf.mxu1 }
 0x201   : > { %v658_v3 = vadd.f32 %v1204_v2, %v1074_v46  ;;  %v696_v4 = vpack.c.bf16 %v670_v62, %v669_v61  ;;  %v665_v7 = vmax.f32 %v647_v63, 0.0  ;;  %v675_v19 = vadd.f32 %v667_v8, %v1687_v28 }
 0x202   : > { %v649_v6 = vpop.f32.mrf.mxu1 }
 0x203   : > { %v668_v9 = vmax.f32 %v658_v3, 0.0  ;;  %v650_v10 = vadd.f32 %v1074_v46, %v649_v6  ;;  %1221 = vmatprep.mubr.bf16.mxu0 %v696_v4  ;;  %v673_v16 = vadd.f32 %v665_v7, %v1679_v26 }
 0x204   : > { %1222 = vmatmul.mubr.bf16.vlgmr.msra.gmra.mxu0 %v697_v5 }
 0x205   : > { %v666_v18 = vmax.f32 %v650_v10, 0.0  ;;  %v1734_v13 = vadd.f32 %v668_v9, %v1675_v25  ;;  %v1084_v25 = vld [vmem:[%s1796_s4 + $0x2] ss:$0 sm:$0xff] }
 0x207   : > { %v674_v17 = vadd.f32 %v666_v18, %v1683_v27  ;;  %v699_v21 = vpack.c.bf16 %v1734_v13, %v675_v19 }
 0x209   : > { %v698_v20 = vpack.c.bf16 %v674_v17, %v673_v16 }
 0x20b   : > { %1225 = vmatprep.mubr.bf16.mxu0 %v698_v20 }
 0x20c   : > { %1226 = vmatmul.mubr.bf16.gmra.mxu0 %v699_v21 }
 0x2c4   : > { %v1223_v15 = vpop.f32.mrf.mxu0 }
 0x2c5   : > { %v797_v28 = vadd.f32 %v1223_v15, %v1084_v25 }
 0x2c6   : > { %v788_v26 = vpop.f32.mrf.mxu0 }
 0x2c7   : > { %v789_v27 = vadd.f32 %v1084_v25, %v788_v26  ;;  %v821_v35 = vmax.f32 %v797_v28, 0.0 }
 0x2c8   : > { %v1224_v29 = vpop.f32.mrf.mxu0 }
 0x2c9   : > { %v819_v30 = vmax.f32 %v789_v27, 0.0  ;;  %v800_v33 = vadd.f32 %v1224_v29, %v1084_v25  ;;  %v829_v42 = vadd.f32 %v821_v35, %v671_v0 }
 0x2ca   : > { %v791_v31 = vpop.f32.mrf.mxu0 }
 0x2cb   : > { %v827_v32 = vadd.f32 %v819_v30, %v669_v61  ;;  %v792_v34 = vadd.f32 %v1084_v25, %v791_v31  ;;  %v822_v39 = vmax.f32 %v800_v33, 0.0 }
 0x2cc   : > { %v1227_v36 = vpop.f32.mrf.mxu0 }
 0x2cd   : > { %v820_v37 = vmax.f32 %v792_v34, 0.0  ;;  %1261 = vmatprep.mubr.f32.mxu1 %v827_v32  ;;  %v813_v43 = vadd.f32 %v1227_v36, %v1084_v25  ;;  %v830_v47 = vadd.f32 %v822_v39, %v1727_v59 }
 0x2ce   : > { %v804_v38 = vpop.f32.mrf.mxu0 }
 0x2cf   : > { %v828_v40 = vadd.f32 %v820_v37, %v670_v62  ;;  %v805_v41 = vadd.f32 %v1084_v25, %v804_v38  ;;  %v825_v51 = vmax.f32 %v813_v43, 0.0 }
 0x2d0   : > { %v1228_v44 = vpop.f32.mrf.mxu0 }
 0x2d1   : > { %v823_v45 = vmax.f32 %v805_v41, 0.0  ;;  %1262 = vmatmul.mubr.f32.vlgmr.msra.gmra.mxu1 %v828_v40  ;;  %v816_v49 = vadd.f32 %v1228_v44, %v1084_v25  ;;  %v833_v55 = vadd.f32 %v825_v51, %v675_v19 }
 0x2d2   : > { %v807_v46 = vpop.f32.mrf.mxu0  ;;  %1264 = vmatprep.mubr.f32.mxu1 %v829_v42 }
 0x2d3   : > { %v831_v48 = vadd.f32 %v823_v45, %v673_v16  ;;  %v808_v50 = vadd.f32 %v1084_v25, %v807_v46  ;;  %v826_v53 = vmax.f32 %v816_v49, 0.0 }
 0x2d5   : > { %v824_v52 = vmax.f32 %v808_v50, 0.0  ;;  %1265 = vmatmul.mubr.f32.gmra.mxu1 %v830_v47  ;;  %v834_v56 = vadd.f32 %v826_v53, %v1734_v13 }
 0x2d6   : > { %1267 = vmatprep.mubr.f32.mxu1 %v831_v48 }
 0x2d7   : > { %v832_v54 = vadd.f32 %v824_v52, %v674_v17 }
 0x2d9   : > { %1268 = vmatmul.mubr.f32.gmra.mxu1 %v832_v54 }
 0x2da   : > { %1270 = vmatprep.mubr.f32.mxu1 %v833_v55 }
 0x2dd   : > { %1271 = vmatmul.mubr.f32.gmra.mxu1 %v834_v56 }
 0x391   : > { %v1263_v58 = vpop.f32.mrf.mxu1 }
 0x392   : > { %v930_v59 = vadd.f32 %v1263_v58, %v1093_v57 }
 0x393   : > { %v924_v60 = vpop.f32.mrf.mxu1 }
 0x394   : > { %965 = vst.msk [vmem:[%s314_s19 + $0x8] sm:$0xff] %vm963_vm0, %v930_v59  ;;  %v925_v61 = vadd.f32 %v1093_v57, %v924_v60 }
 0x395   : > { %v1266_v62 = vpop.f32.mrf.mxu1 }
 0x396   : > { %964 = vst.msk [vmem:[%s314_s19] sm:$0xff] %vm963_vm0, %v925_v61  ;;  %v940_v63 = vadd.f32 %v1266_v62, %v1093_v57 }
 0x397   : > { %v934_v0 = vpop.f32.mrf.mxu1 }
 0x398   : > { %967 = vst.msk [vmem:[%s314_s19 + $0x18] sm:$0xff] %vm963_vm0, %v940_v63  ;;  %v935_v1 = vadd.f32 %v1093_v57, %v934_v0 }
 0x399   : > { %v1269_v2 = vpop.f32.mrf.mxu1 }
 0x39a   : > { %966 = vst.msk [vmem:[%s314_s19 + $0x10] sm:$0xff] %vm963_vm0, %v935_v1  ;;  %v950_v3 = vadd.f32 %v1269_v2, %v1093_v57 }
 0x39b   : > { %v944_v4 = vpop.f32.mrf.mxu1 }
 0x39c   : > { %969 = vst.msk [vmem:[%s314_s19 + $0x28] sm:$0xff] %vm963_vm0, %v950_v3  ;;  %v945_v5 = vadd.f32 %v1093_v57, %v944_v4 }
 0x39d   : > { %v1272_v6 = vpop.f32.mrf.mxu1 }
 0x39e   : > { %968 = vst.msk [vmem:[%s314_s19 + $0x20] sm:$0xff] %vm963_vm0, %v945_v5  ;;  %v960_v7 = vadd.f32 %v1272_v6, %v1093_v57 }
 0x39f   : > { %v954_v9 = vpop.f32.mrf.mxu1 }
 0x3a0   : > { %971 = vst.msk [vmem:[%s314_s19 + $0x38] sm:$0xff] %vm963_vm0, %v960_v7  ;;  %v955_v10 = vadd.f32 %v1093_v57, %v954_v9 }
 0x3a2   : > { %970 = vst.msk [vmem:[%s314_s19 + $0x30] sm:$0xff] %vm963_vm0, %v955_v10 }
 0x3a3 PF: > { %p18_p7 = scmp.ge.s32.totalorder %s1538_s12, 6   ;;  %s1812_s24 = smov %s1435_s25 }
 0x3a4   : > { %s1813_s25 = smov %s1439_s26  ;;  %s1814_s26 = smov %s1555_s20 }
 0x3a5   : > { %s1815_s27 = smov %s1538_s12  ;;  %20 = sbr.rel (!%p18_p7) target bundleno = 4 (0x4), region = 96 }
 0x3aa   :  { %994 = vsyncpa [#allocation3], 1 }
 0x3ab   :  { %996 = vsyncpa [#allocation3 + $0x1], 1 }
 0x3ac   :  { %997 = vsyncpa [#allocation5], 1 }

</bundles_post_ra>
